<compile_context>
chip_gen: v6e
topology: v6e:2x2x1
jax: 0.10.0
libtpu: 0.0.40
codegen_flags: <defaults>
</compile_context>

<pallas_src>
import jax
import jax.numpy as jnp
from jax.experimental import pallas as pl
from jax.experimental.pallas import tpu as pltpu

_INV_SQRT2 = 0.7071067811865476


def _unary_func_f32(x):
    # The "arbitrary unary function" this Functional wraps: exact (erf) GELU,
    # computed in float32.  identity / relu / tanh / etc. are drop-ins.
    x = x.astype(jnp.float32)
    return 0.5 * x * (1.0 + jax.lax.erf(x * _INV_SQRT2))


def _apply_unary(x):
    # Plain-JAX application (fast path / tail path / reference).
    return _unary_func_f32(x).astype(x.dtype)


def _functional_kernel(x_ref, o_ref):
    o_ref[...] = _unary_func_f32(x_ref[...]).astype(o_ref.dtype)


def _min_sublane(dtype):
    itemsize = jnp.dtype(dtype).itemsize
    if itemsize >= 4:
        return 8
    if itemsize == 2:
        return 16
    return 32


def _tpu_generation_info():
    """Returns (tensorcores_per_chip, vmem_budget_bytes) for the default device."""
    num_tc, vmem_budget = 1, 64 << 20          # v5e / v6e: 1 TC, 128 MiB physical VMEM
    try:
        kind = jax.devices()[0].device_kind.lower()
    except Exception:
        return num_tc, vmem_budget
    if "v7" in kind or "7x" in kind:
        num_tc, vmem_budget = 2, 48 << 20      # v7x: 2 TCs/chip, only 64 MiB physical
    return num_tc, vmem_budget


def _launch(x2d, *, target_block_bytes):
    """pallas_call over a lane-dense (rows, 128) slab."""
    rows, lane = x2d.shape
    dtype = x2d.dtype
    itemsize = jnp.dtype(dtype).itemsize
    min_sub = _min_sublane(dtype)
    bytes_per_row = lane * itemsize

    num_tc, vmem_budget = _tpu_generation_info()
    # Single-TC chips: the grid is a serial loop -> few, large steps.
    # v7x: keep >= 8 steps so both TensorCores get work ("parallel" axis).
    min_grid_steps = 8 if num_tc >= 2 else 2
    min_block_rows = max(min_sub, (512 << 10) // bytes_per_row)   # ~512 KiB floor

    if rows <= min_sub:
        tile_rows = rows                      # single full-array block (legal)
    else:
        tile_rows = min(rows, max(min_sub, target_block_bytes // bytes_per_row))
        cap_rows = rows // min_grid_steps
        # Only force more grid steps if blocks stay >= ~512 KiB.
        if cap_rows >= min_block_rows:
            tile_rows = min(tile_rows, cap_rows)
        # VMEM guard: (in + out) double-buffered + ~2 f32 compute temps / block.
        per_row_vmem = lane * (4 * itemsize + 2 * 4)
        tile_rows = min(tile_rows, max(min_sub, vmem_budget // per_row_vmem))
        tile_rows = max(min_sub, (tile_rows // min_sub) * min_sub)

    grid = (pl.cdiv(rows, tile_rows),)
    n = rows * lane
    cost = pl.CostEstimate(
        flops=int(10 * n),
        transcendentals=int(n),
        bytes_accessed=int(2 * n * itemsize),
    )

    return pl.pallas_call(
        _functional_kernel,
        out_shape=jax.ShapeDtypeStruct((rows, lane), dtype),
        grid_spec=pltpu.PrefetchScalarGridSpec(
            num_scalar_prefetch=0,
            grid=grid,
            in_specs=[pl.BlockSpec((tile_rows, lane), lambda i: (i, 0))],
            out_specs=pl.BlockSpec((tile_rows, lane), lambda i: (i, 0)),
        ),
        compiler_params=pltpu.CompilerParams(
            dimension_semantics=("parallel",),
            vmem_limit_bytes=vmem_budget,
        ),
        cost_estimate=cost,
    )(x2d)


def functional_forward(x, *, target_block_bytes=4 << 20,
                       min_elements_for_kernel=1 << 16):
    """Apply the wrapped elementwise function via a tiled Pallas kernel."""
    orig_shape = x.shape
    total = x.size
    lane = 128

    # Tiny activations: custom-call launch overhead exceeds the work.
    if total < max(min_elements_for_kernel, 1):
        return _apply_unary(x)

    x_flat = x.reshape(-1)
    rem = total % lane
    aligned = total - rem

    if aligned == 0:                      # everything is "tail"
        return _apply_unary(x)

    rows = aligned // lane
    if rem:
        # Kernel over the lane-aligned prefix; the <=127-element tail is done
        # in plain JAX.  Avoids the full-array pad + slice HBM copies.
        x2d = x_flat[:aligned].reshape(rows, lane)
        tail = x_flat[aligned:]
    else:
        x2d = x_flat.reshape(rows, lane)  # free reshape, no extra HBM copy
        tail = None

    out2d = _launch(x2d, target_block_bytes=target_block_bytes)

    out_flat = out2d.reshape(-1)
    if tail is not None:
        out_flat = jnp.concatenate([out_flat, _apply_unary(tail)])
    return out_flat.reshape(orig_shape)


if __name__ == "__main__":
    key = jax.random.PRNGKey(0)
    # Small NCHW activation, consistent with Functional's typical use between
    # conv layers in the original codebase.
    x = jax.random.normal(key, (2, 4, 16, 16), dtype=jnp.float32)
    y_ref = _apply_unary(x)

    # Force the Pallas path even for this small activation so the kernel runs.
    y = functional_forward(x, min_elements_for_kernel=0)
    jax.block_until_ready(y)
    assert y.shape == x.shape and y.dtype == x.dtype
    assert jnp.max(jnp.abs(y - y_ref)) < 1e-5

    # Default call takes the small-input fast path; must agree.
    y_fast = functional_forward(x)
    jax.block_until_ready(y_fast)
    assert jnp.max(jnp.abs(y_fast - y_ref)) < 1e-5

    # bf16 exercises the (16, 128) sublane tiling.
    xb = x.astype(jnp.bfloat16)
    yb = functional_forward(xb, min_elements_for_kernel=0)
    jax.block_until_ready(yb)
    yb_ref = _apply_unary(xb)
    assert yb.shape == xb.shape and yb.dtype == xb.dtype
    assert jnp.max(jnp.abs(yb.astype(jnp.float32) - yb_ref.astype(jnp.float32))) < 1e-2

    # Non-128-aligned total: aligned-prefix kernel + tiny jnp tail.
    xu = jax.random.normal(jax.random.PRNGKey(1), (3, 5, 67), dtype=jnp.float32)
    yu = functional_forward(xu, min_elements_for_kernel=0)
    jax.block_until_ready(yu)
    yu_ref = _apply_unary(xu)
    assert yu.shape == xu.shape and yu.dtype == xu.dtype
    assert jnp.max(jnp.abs(yu - yu_ref)) < 1e-5

    print("KERNEL_OK")
</pallas_src>

<mosaic_0001>
module attributes {stable_mosaic.version = 11 : i64} {
  func.func @_functional_kernel(%arg0: i32, %arg1: memref<16x128xf32, #tpu.memory_space<vmem>>, %arg2: memref<16x128xf32, #tpu.memory_space<vmem>>) attributes {dimension_semantics = [#tpu.dimension_semantics<parallel>], iteration_bounds = array<i64: 1>, scalar_prefetch = 0 : i64, scratch_operands = 0 : i64, tpu.core_type = #tpu.core_type<tc>, window_params = [{transform_indices = @transform_0, window_bounds = array<i64: 16, 128>}, {transform_indices = @transform_1, window_bounds = array<i64: 16, 128>}]} {
    %c0 = arith.constant 0 : index
    %c0_0 = arith.constant 0 : index
    %0 = vector.load %arg1[%c0, %c0_0] : memref<16x128xf32, #tpu.memory_space<vmem>>, vector<16x128xf32>
    %cst = arith.constant 5.000000e-01 : f32
    %1 = vector.broadcast %cst : f32 to vector<16x128xf32>
    %2 = arith.mulf %1, %0 : vector<16x128xf32>
    %cst_1 = arith.constant 0.707106769 : f32
    %3 = vector.broadcast %cst_1 : f32 to vector<16x128xf32>
    %4 = arith.mulf %0, %3 : vector<16x128xf32>
    %5 = math.erf %4 : vector<16x128xf32>
    %cst_2 = arith.constant 1.000000e+00 : f32
    %6 = vector.broadcast %cst_2 : f32 to vector<16x128xf32>
    %7 = arith.addf %6, %5 : vector<16x128xf32>
    %8 = arith.mulf %2, %7 : vector<16x128xf32>
    %c0_3 = arith.constant 0 : index
    %c0_4 = arith.constant 0 : index
    %9 = vector.load %arg2[%c0_3, %c0_4] : memref<16x128xf32, #tpu.memory_space<vmem>>, vector<16x128xf32>
    tpu.vector_store %arg2[%c0_3, %c0_4], %8 {strides = array<i32>} : memref<16x128xf32, #tpu.memory_space<vmem>>, vector<16x128xf32>,
    return
  }
  func.func @transform_0(%arg0: i32) -> (i32, i32) {
    %c0_i32 = arith.constant 0 : i32
    %c0_i32_0 = arith.constant 0 : i32
    return %arg0, %c0_i32 : i32, i32
  }
  func.func @transform_1(%arg0: i32) -> (i32, i32) {
    %c0_i32 = arith.constant 0 : i32
    %c0_i32_0 = arith.constant 0 : i32
    return %arg0, %c0_i32 : i32, i32
  }
}

</mosaic_0001>

<bundles_post_ra>
// kernel: tpu_custom_call.1
= control target key start
LH: loop header
LB: loop body
LE: loop exit
PB: predicated region body
PF: predicated region fallthrough
CT: control target
= control target key end

     0   :  { %6 = vsyncpa [#allocation3], 0  ;;  %s132_s0 = inlined_call_operand.hbm [shape: f32[16,128], index: 0, kind: input, shape index: {}]   ;;  %s133_s1 = inlined_call_operand.hbm [shape: f32[16,128], index: 1, kind: output, shape index: {}]  }
   0x1   :  { %7 = vsyncpa [#allocation4], 0  ;;  %s106_s6 = smov [#allocation2]  }
   0x2   :  { %s13_s7 = sshll.u32 %s106_s6, 4  ;;  %s14_s7 = int_to_ptr.vmem [resolvable:$true] %s13_s7 }
   0x3   :  { %s70_s8 = scalar_lea.vmem %s14_s7, 256  ;;  %p75_p1 = scmp.lt.s32.totalorder %s14_s7, %s14_s7 }
   0x4   :  { %p71_p0 = scmp.ne.s32.totalorder %s14_s7, %s70_s8  ;;  %p76_p2 = scmp.lt.s32.totalorder %s70_s8, %s70_s8 }
   0x6   :  { %p77_p3 = por %p76_p2, %p75_p1 }
   0x8   :  { %p78_p4 = pnand %p77_p3, %p71_p0 }
   0xa   :  { %81 = shalt.err (!%p78_p4)
}
   0xb   :  { %s107_s9 = smov 128   ;;  %s108_s10 = smov 8  }
   0xc   :  { %19 = dma.hbm_to_vmem [thread:$0]  %s132_s0, 256, %s14_s7, [#allocation3], %s107_s9, %s107_s9, %s108_s10  }
   0xd   :  { %102 = dma.done.wait [#allocation3], 256  }
   0xe   :  { %103 = vsyncadd [#allocation3], 4294967040  ;;  %v23_v0 = vld [vmem:[#allocation2] sm:$0xff]  ;;  %v24_v1 = vld [vmem:[#allocation2 + $0x8] sm:$0xff]  ;;  %s109_s13 = smov [#allocation5]  }
   0xf   :  { %v27_v2 = vmul.f32 0.70710677, %v23_v0  ;;  %v28_v3 = vmul.f32 0.70710677, %v24_v1  ;;  %v25_v4 = vmul.f32 0.5, %v23_v0  ;;  %v26_v6 = vmul.f32 0.5, %v24_v1 }
  0x10   :  { %s42_s14 = sshll.u32 %s109_s13, 4  ;;  %s43_s14 = int_to_ptr.vmem [resolvable:$true] %s42_s14 }
  0x11   :  { %58 = verf.f32 %v27_v2  ;;  %s82_s0 = scalar_lea.vmem %s43_s14, 256  ;;  %p87_p6 = scmp.lt.s32.totalorder %s43_s14, %s43_s14 }
  0x12   :  { %60 = verf.f32 %v28_v3  ;;  %p83_p5 = scmp.ne.s32.totalorder %s43_s14, %s82_s0  ;;  %p88_p7 = scmp.lt.s32.totalorder %s82_s0, %s82_s0 }
  0x14   :  { %p89_p8 = por %p88_p7, %p87_p6 }
  0x16   :  { %p90_p9 = pnand %p89_p8, %p83_p5 }
  0x1e   :  { %v59_v5 = vpop.eup %58 }
  0x1f   :  { %v61_v7 = vpop.eup %60  ;;  %v31_v8 = vadd.f32 1.0, %v59_v5 }
  0x20   :  { %v32_v9 = vadd.f32 1.0, %v61_v7 }
  0x21   :  { %v33_v10 = vmul.f32 %v31_v8, %v25_v4 }
  0x22   :  { %v34_v11 = vmul.f32 %v32_v9, %v26_v6 }
  0x23   :  { %35 = vst [vmem:[#allocation5] sm:$0xff] %v33_v10 }
  0x24   :  { %36 = vst [vmem:[#allocation5 + $0x8] sm:$0xff] %v34_v11 }
  0x25   :  { %93 = shalt.err (!%p90_p9)
}
  0x26   :  { %48 = dma.vmem_to_hbm [thread:$0]  %s43_s14, 256, %s133_s1, [#allocation4], %s107_s9, %s107_s9, %s108_s10  }
  0x27   :  { %104 = dma.done.wait [#allocation4], 256  }
  0x28   :  { %105 = vsyncadd [#allocation4], 4294967040 }
  0x29   :  { %52 = vsyncpa [#allocation3], 1 }
  0x2a   :  { %53 = vsyncpa [#allocation4], 1 }

</bundles_post_ra>
